<compile_context>
chip_gen: v7x
topology: tpu7x:2x2x1
jax: 0.10.0
libtpu: 0.0.40
codegen_flags: <defaults>
</compile_context>

<pallas_src>
import jax
import jax.numpy as jnp
from jax.experimental import pallas as pl
from jax.experimental.pallas import tpu as pltpu  # noqa: F401  (TPU backend)

# ----------------------------- small demo config ----------------------------
BATCH = 2
SEQ = 8
HIDDEN = 32          # config.hidden_size
INTERMEDIATE = 64    # config.intermediate_size
LN_EPS = 1e-12


def bert_output_kernel(h_ref, x_ref, w_ref, vec_ref, out_ref):
    """Whole-problem BertOutput (single grid step).

    h_ref:   (R, I)  hidden_states from BertIntermediate
    x_ref:   (R, H)  input_tensor (residual branch)
    w_ref:   (I, H)  dense weight, stored (in, out)
    vec_ref: (3, H)  row 0 = bias, row 1 = LN gamma, row 2 = LN beta
    out_ref: (R, H)
    """
    h = h_ref[...]                        # (R, I) f32
    x = x_ref[...]                        # (R, H) f32
    vecs = vec_ref[...]                   # (3, H) f32
    bias = vecs[0:1, :]                   # (1, H)
    gamma = vecs[1:2, :]                  # (1, H)
    beta = vecs[2:3, :]                   # (1, H)

    # dense + dropout(identity, eval mode) + residual.
    # Bias folded into the residual add (saves one VPU pass over the tile).
    resid = x + bias
    z = jnp.dot(h, w_ref[...], preferred_element_type=jnp.float32) + resid

    # LayerNorm, single-pass statistics (sum & sum-of-squares) in f32.
    inv_h = 1.0 / z.shape[-1]
    s1 = jnp.sum(z, axis=-1, keepdims=True)
    s2 = jnp.sum(z * z, axis=-1, keepdims=True)
    mean = s1 * inv_h
    var = jnp.maximum(s2 * inv_h - mean * mean, 0.0)   # clamp cancellation
    out = (z - mean) * jax.lax.rsqrt(var + LN_EPS) * gamma + beta

    out_ref[...] = out.astype(out_ref.dtype)


def bert_output(hidden_states, input_tensor, weight, bias, ln_gamma, ln_beta):
    """hidden_states: (B, S, I), input_tensor: (B, S, H) -> (B, S, H)."""
    B, S, I = hidden_states.shape
    H = input_tensor.shape[-1]
    rows = B * S

    h2d = hidden_states.reshape(rows, I)
    x2d = input_tensor.reshape(rows, H)
    # Pack the three tiny per-feature vectors into one (3, H) parameter array.
    vecs = jnp.stack([bias, ln_gamma, ln_beta], axis=0)

    # No grid: whole arrays fit one VMEM tile on every TPU generation, so one
    # kernel invocation, one DMA per operand, no per-step overhead.
    #
    # Scaling notes (not needed at demo shape): for real BERT (I=3072, H=768)
    # use a 1-D row grid with ROW_TILE=256-512 marked "parallel", keep W
    # resident (constant index_map), cast h/W to bf16 for the matmul (keep
    # preferred_element_type=f32 and LN math in f32), and on v7x size tiles
    # against 64 MiB VMEM with an explicit
    # pltpu.CompilerParams(vmem_limit_bytes=...).
    out2d = pl.pallas_call(
        bert_output_kernel,
        out_shape=jax.ShapeDtypeStruct((rows, H), hidden_states.dtype),
        in_specs=[
            pl.BlockSpec((rows, I), lambda: (0, 0)),   # hidden_states
            pl.BlockSpec((rows, H), lambda: (0, 0)),   # input_tensor
            pl.BlockSpec((I, H), lambda: (0, 0)),      # dense weight
            pl.BlockSpec((3, H), lambda: (0, 0)),      # packed bias/gamma/beta
        ],
        out_specs=pl.BlockSpec((rows, H), lambda: (0, 0)),
    )(h2d, x2d, weight, vecs)

    return out2d.reshape(B, S, H)


def _reference(hidden_states, input_tensor, weight, bias, ln_gamma, ln_beta):
    y = jnp.einsum("bsi,ih->bsh", hidden_states, weight) + bias
    z = y + input_tensor
    mean = jnp.mean(z, axis=-1, keepdims=True)
    var = jnp.mean((z - mean) ** 2, axis=-1, keepdims=True)
    return (z - mean) * jax.lax.rsqrt(var + LN_EPS) * ln_gamma + ln_beta


if __name__ == "__main__":
    key = jax.random.PRNGKey(0)
    k_h, k_x, k_w, k_b = jax.random.split(key, 4)

    hidden_states = jax.random.normal(k_h, (BATCH, SEQ, INTERMEDIATE), jnp.float32)
    input_tensor = jax.random.normal(k_x, (BATCH, SEQ, HIDDEN), jnp.float32)
    weight = jax.random.normal(k_w, (INTERMEDIATE, HIDDEN), jnp.float32) * 0.02
    bias = jax.random.normal(k_b, (HIDDEN,), jnp.float32) * 0.02
    ln_gamma = jnp.ones((HIDDEN,), jnp.float32)
    ln_beta = jnp.zeros((HIDDEN,), jnp.float32)

    # TODO(synk): nn.Dropout is treated as identity (eval mode); training-mode
    # dropout masks are not implemented.
    out = bert_output(hidden_states, input_tensor, weight, bias, ln_gamma, ln_beta)
    out = jax.block_until_ready(out)

    ref = _reference(hidden_states, input_tensor, weight, bias, ln_gamma, ln_beta)
    assert out.shape == (BATCH, SEQ, HIDDEN)
    assert jnp.all(jnp.isfinite(out))
    assert jnp.max(jnp.abs(out - ref)) < 1e-4, float(jnp.max(jnp.abs(out - ref)))
    print("KERNEL_OK")
</pallas_src>

<mosaic_0001>
module attributes {stable_mosaic.version = 11 : i64} {
  func.func @bert_output_kernel(%arg0: memref<16x64xf32, #tpu.memory_space<vmem>>, %arg1: memref<16x32xf32, #tpu.memory_space<vmem>>, %arg2: memref<64x32xf32, #tpu.memory_space<vmem>>, %arg3: memref<3x32xf32, #tpu.memory_space<vmem>>, %arg4: memref<16x32xf32, #tpu.memory_space<vmem>>) attributes {dimension_semantics = [], scalar_prefetch = 0 : i64, scratch_operands = 0 : i64, tpu.core_type = #tpu.core_type<tc>} {
    %c0 = arith.constant 0 : index
    %c0_0 = arith.constant 0 : index
    %0 = vector.load %arg0[%c0, %c0_0] : memref<16x64xf32, #tpu.memory_space<vmem>>, vector<16x64xf32>
    %c0_1 = arith.constant 0 : index
    %c0_2 = arith.constant 0 : index
    %1 = vector.load %arg1[%c0_1, %c0_2] : memref<16x32xf32, #tpu.memory_space<vmem>>, vector<16x32xf32>
    %c0_3 = arith.constant 0 : index
    %c0_4 = arith.constant 0 : index
    %2 = vector.load %arg3[%c0_3, %c0_4] : memref<3x32xf32, #tpu.memory_space<vmem>>, vector<3x32xf32>
    %3 = vector.extract_strided_slice %2 {offsets = [0, 0], sizes = [1, 32], strides = [1, 1]} : vector<3x32xf32> to vector<1x32xf32>
    %4 = vector.extract_strided_slice %2 {offsets = [1, 0], sizes = [1, 32], strides = [1, 1]} : vector<3x32xf32> to vector<1x32xf32>
    %5 = vector.extract_strided_slice %2 {offsets = [2, 0], sizes = [1, 32], strides = [1, 1]} : vector<3x32xf32> to vector<1x32xf32>
    %6 = vector.broadcast %3 : vector<1x32xf32> to vector<16x32xf32>
    %7 = arith.addf %1, %6 : vector<16x32xf32>
    %c0_5 = arith.constant 0 : index
    %c0_6 = arith.constant 0 : index
    %8 = vector.load %arg2[%c0_5, %c0_6] : memref<64x32xf32, #tpu.memory_space<vmem>>, vector<64x32xf32>
    %cst = arith.constant dense<0.000000e+00> : vector<16x32xf32>
    %9 = tpu.matmul %0, %8, %cst {dimension_numbers = #tpu.dot_dimension_numbers<[1], [0], [0], [1], [0, 0, 1, 1], [], []>} : vector<16x64xf32>, vector<64x32xf32>, vector<16x32xf32> -> vector<16x32xf32>
    %10 = arith.addf %9, %7 : vector<16x32xf32>
    %cst_7 = arith.constant dense<0.000000e+00> : vector<16xf32>
    %11 = vector.multi_reduction <add>, %10, %cst_7 [1] : vector<16x32xf32> to vector<16xf32>
    %12 = vector.shape_cast %11 : vector<16xf32> to vector<16x1xf32>
    %13 = arith.mulf %10, %10 : vector<16x32xf32>
    %cst_8 = arith.constant dense<0.000000e+00> : vector<16xf32>
    %14 = vector.multi_reduction <add>, %13, %cst_8 [1] : vector<16x32xf32> to vector<16xf32>
    %15 = vector.shape_cast %14 : vector<16xf32> to vector<16x1xf32>
    %cst_9 = arith.constant 3.125000e-02 : f32
    %16 = vector.broadcast %cst_9 : f32 to vector<16x1xf32>
    %17 = arith.mulf %12, %16 : vector<16x1xf32>
    %cst_10 = arith.constant 3.125000e-02 : f32
    %18 = vector.broadcast %cst_10 : f32 to vector<16x1xf32>
    %19 = arith.mulf %15, %18 : vector<16x1xf32>
    %20 = arith.mulf %17, %17 : vector<16x1xf32>
    %21 = arith.subf %19, %20 : vector<16x1xf32>
    %cst_11 = arith.constant 0.000000e+00 : f32
    %22 = vector.broadcast %cst_11 : f32 to vector<16x1xf32>
    %23 = arith.maximumf %21, %22 : vector<16x1xf32>
    %24 = vector.broadcast %17 : vector<16x1xf32> to vector<16x32xf32>
    %25 = arith.subf %10, %24 : vector<16x32xf32>
    %cst_12 = arith.constant 9.99999996E-13 : f32
    %26 = vector.broadcast %cst_12 : f32 to vector<16x1xf32>
    %27 = arith.addf %23, %26 : vector<16x1xf32>
    %28 = math.rsqrt %27 : vector<16x1xf32>
    %29 = vector.broadcast %28 : vector<16x1xf32> to vector<16x32xf32>
    %30 = arith.mulf %25, %29 : vector<16x32xf32>
    %31 = vector.broadcast %4 : vector<1x32xf32> to vector<16x32xf32>
    %32 = arith.mulf %30, %31 : vector<16x32xf32>
    %33 = vector.broadcast %5 : vector<1x32xf32> to vector<16x32xf32>
    %34 = arith.addf %32, %33 : vector<16x32xf32>
    %c0_13 = arith.constant 0 : index
    %c0_14 = arith.constant 0 : index
    %35 = vector.load %arg4[%c0_13, %c0_14] : memref<16x32xf32, #tpu.memory_space<vmem>>, vector<16x32xf32>
    tpu.vector_store %arg4[%c0_13, %c0_14], %34 {strides = array<i32>} : memref<16x32xf32, #tpu.memory_space<vmem>>, vector<16x32xf32>,
    return
  }
}

</mosaic_0001>

<bundles_post_ra>
// kernel: tpu_custom_call.1
= control target key start
LH: loop header
LB: loop body
LE: loop exit
PB: predicated region body
PF: predicated region fallthrough
CT: control target
= control target key end

     0   :  { %vm37_vm0 = vcmask 523264   ;;  %s347_s0 = inlined_call_operand.vmem [shape: f32[16,64], index: 0, kind: input, shape index: {}]   ;;  %s348_s1 = inlined_call_operand.vmem [shape: f32[16,32], index: 1, kind: input, shape index: {}]   ;;  %s349_s2 = inlined_call_operand.vmem [shape: f32[64,32], index: 2, kind: input, shape index: {}]   ;;  %s350_s3 = inlined_call_operand.vmem [shape: f32[3,32], index: 3, kind: input, shape index: {}]   ;;  %s351_s4 = inlined_call_operand.hbm [shape: f32[16,32], index: 4, kind: output, shape index: {}]  }
   0x1   :  { %v29_v0 = vld [vmem:[%s349_s2] sm:$0xff]  ;;  %v30_v1 = vld [vmem:[%s349_s2 + $0x8] sm:$0xff]  ;;  %v31_v2 = vld [vmem:[%s349_s2 + $0x10] sm:$0xff] }
   0x2   :  { %v213_v3 = vpack.c.bf16 %v30_v1, %v29_v0  ;;  %v32_v4 = vld [vmem:[%s349_s2 + $0x18] sm:$0xff]  ;;  %v33_v6 = vld [vmem:[%s349_s2 + $0x20] sm:$0xff]  ;;  %v34_v7 = vld [vmem:[%s349_s2 + $0x28] sm:$0xff] }
   0x3   :  { %v217_v5 = vpack.c.bf16 %v32_v4, %v31_v2  ;;  %v18_v8 = vld [vmem:[%s347_s0] sm:$0xff] }
   0x4   :  { %214 = vmatprep.subr.bf16.mxu0 %v213_v3  ;;  %210 = vmatprep.mubr.msk.f32.mxu0 %vm37_vm0, %v18_v8 }
   0x5   :  { %216 = vmatpush3.bf16.msra.mxu0 %v213_v3 }
   0x6   :  { %9 = vsyncpa [#allocation3], 0  ;;  %218 = vmatprep.subr.bf16.mxu0 %v217_v5  ;;  %v221_v9 = vpack.c.bf16 %v34_v7, %v33_v6  ;;  %v35_v10 = vld [vmem:[%s349_s2 + $0x30] sm:$0xff]  ;;  %v36_v11 = vld [vmem:[%s349_s2 + $0x38] sm:$0xff]  ;;  %v23_v14 = vlaneseq  ;;  %vm119_vm1 = vcmask 261120  }
   0x7   :  { %v225_v12 = vpack.c.bf16 %v36_v11, %v35_v10  ;;  %v19_v13 = vld [vmem:[%s347_s0 + $0x8] sm:$0xff]  ;;  %v22_v17 = vld [vmem:[%s350_s3] sm:$0x7]  ;;  %s260_s0 = smov [#allocation2]  }
   0x8   :  { %v24_v15 = vshrl.u32 %v23_v14, 7  ;;  %v21_v19 = vld [vmem:[%s348_s1 + $0x8] sm:$0xff]  ;;  %v20_v20 = vld [vmem:[%s348_s1] sm:$0xff]  ;;  %s171_s1 = sshll.u32 %s260_s0, 4  ;;  %s172_s1 = int_to_ptr.vmem [resolvable:$true] %s171_s1 }
   0x9   :  { %220 = vmatpush3.bf16.msra.mxu0 %v217_v5  ;;  %s236_s3 = scalar_lea.vmem %s172_s1, 256  ;;  %p241_p1 = scmp.lt.s32.totalorder %s172_s1, %s172_s1 }
   0xa   :  { %222 = vmatprep.subr.bf16.mxu0 %v221_v9  ;;  %v25_v16 = vsub.s32 0, %v24_v15  ;;  %v154_v49 = vsub.s32 1, %v24_v15  ;;  %v160_v50 = vsub.s32 2, %v24_v15  ;;  %p237_p0 = scmp.ne.s32.totalorder %s172_s1, %s236_s3  ;;  %p242_p2 = scmp.lt.s32.totalorder %s236_s3, %s236_s3 }
   0xc   :  { %v26_v18 = vrot.slane %v22_v17, %v25_v16  ;;  %v155_v51 = vrot.slane %v22_v17, %v154_v49  ;;  %v161_v54 = vrot.slane %v22_v17, %v160_v50  ;;  %p243_p3 = por %p242_p2, %p241_p1 }
   0xd   :  { %224 = vmatpush3.bf16.msra.mxu0 %v221_v9 }
   0xe   :  { %226 = vmatprep.subr.bf16.mxu0 %v225_v12  ;;  %v28_v21 = vadd.f32 %v26_v18, %v21_v19  ;;  %v27_v22 = vadd.f32 %v26_v18, %v20_v20  ;;  %p244_p4 = pnand %p243_p3, %p237_p0 }
  0x11   :  { %228 = vmatpush3.bf16.msra.mxu0 %v225_v12 }
  0x14   :  { %211 = vmatmul.mubr.msk.f32.vlgmr.msra.gmra.mrb[0].mxu0 %vm37_vm0, %v19_v13 }
  0xe7   :  { %v212_v23 = vpop.f32.mrb[0].mxu0 }
  0xe8   :  { %v110_v24 = vpop.f32.mrb[1].mxu0  ;;  %v116_v25 = vadd.f32 %v212_v23, %v28_v21 }
  0xe9   :  { %v111_v26 = vadd.f32 %v110_v24, %v27_v22 }
  0xea   :  { %v127_v30 = vmul.f32 %v116_v25, %v116_v25  ;;  %v123_v31 = vsel %vm119_vm1, %v116_v25, 0.0 }
  0xeb   :  { %v120_v27 = vsel %vm119_vm1, %v111_v26, 0.0  ;;  %v126_v28 = vmul.f32 %v111_v26, %v111_v26 }
  0xec   :  { %121 = vadd.xlane.f32.xlu0 %v120_v27  ;;  %v131_v32 = vsel %vm119_vm1, %v127_v30, 0.0 }
  0xed   :  { %v128_v29 = vsel %vm119_vm1, %v126_v28, 0.0 }
  0xee   :  { %129 = vadd.xlane.f32.xlu1 %v128_v29 }
  0xf0   :  { %124 = vadd.xlane.f32.xlu0 %v123_v31 }
  0xf2   :  { %132 = vadd.xlane.f32.xlu1 %v131_v32 }
 0x179   :  { %v122_v33 = vpop.xlane.xlu0 %121 }
 0x17a   :  { %v134_v34 = vmul.f32 0.03125, %v122_v33 }
 0x17b   :  { %v130_v35 = vpop.xlane.xlu1 %129 }
 0x17c   :  { %v138_v36 = vmul.f32 %v134_v34, %v134_v34  ;;  %v136_v37 = vmul.f32 0.03125, %v130_v35  ;;  %v144_v52 = vsub.f32 %v111_v26, %v134_v34 }
 0x17d   :  { %v125_v38 = vpop.xlane.xlu0 %124 }
 0x17e   :  { %v140_v39 = vsub.f32 %v136_v37, %v138_v36  ;;  %v135_v40 = vmul.f32 0.03125, %v125_v38 }
 0x17f   :  { %v133_v41 = vpop.xlane.xlu1 %132 }
 0x180   :  { %v142_v42 = vmax.f32 %v140_v39, 0.0  ;;  %v139_v43 = vmul.f32 %v135_v40, %v135_v40  ;;  %v137_v44 = vmul.f32 0.03125, %v133_v41  ;;  %v145_v56 = vsub.f32 %v116_v25, %v135_v40 }
 0x182   :  { %v146_v45 = vadd.f32 1e-12, %v142_v42  ;;  %v141_v46 = vsub.f32 %v137_v44, %v139_v43 }
 0x184   :  { %232 = vrsqrt.f32 %v146_v45  ;;  %v143_v47 = vmax.f32 %v141_v46, 0.0 }
 0x186   :  { %v147_v48 = vadd.f32 1e-12, %v143_v47 }
 0x188   :  { %234 = vrsqrt.f32 %v147_v48 }
 0x18e   :  { %v233_v53 = vpop.eup %232 }
 0x18f   :  { %v150_v55 = vmul.f32 %v233_v53, %v144_v52 }
 0x191   :  { %v156_v57 = vmul.f32 %v155_v51, %v150_v55 }
 0x192   :  { %v235_v58 = vpop.eup %234 }
 0x193   :  { %v151_v59 = vmul.f32 %v235_v58, %v145_v56  ;;  %v162_v60 = vadd.f32 %v161_v54, %v156_v57 }
 0x195   :  { %v157_v61 = vmul.f32 %v155_v51, %v151_v59  ;;  %164 = vst.msk [vmem:[#allocation2] sm:$0xff] %vm119_vm1, %v162_v60 }
 0x197   :  { %v163_v62 = vadd.f32 %v161_v54, %v157_v61 }
 0x199   :  { %165 = vst.msk [vmem:[#allocation2 + $0x8] sm:$0xff] %vm119_vm1, %v163_v62 }
 0x19a   :  { %247 = shalt.err (!%p244_p4)
}
 0x19b   :  { %s248_s16 = scalar_lea.hbm %s351_s4, 256 }
 0x19c   :  { %p249_p5 = scmp.ne.s32.totalorder %s351_s4, %s248_s16  ;;  %p252_p6 = scmp.lt.u32.totalorder %s248_s16, %s351_s4 }
 0x19e   :  { %p254_p7 = pnand %p252_p6, %p249_p5 }
 0x1a0   :  { %257 = shalt.err (!%p254_p7)
}
 0x1a1   :  { %s261_s21 = smov 128   ;;  %s262_s22 = smov 8  }
 0x1a2   :  { %177 = dma.vmem_to_hbm [thread:$0]  %s172_s1, 256, %s351_s4, [#allocation3], %s261_s21, %s261_s21, %s262_s22  }
 0x1a3   :  { %258 = dma.done.wait [#allocation3], 256  }
 0x1a4   :  { %259 = vsyncadd [#allocation3], 4294967040 }
 0x1a5   :  { %181 = vsyncpa [#allocation3], 1 }

</bundles_post_ra>
